<compile_context>
chip_gen: v5e
topology: v5e:2x2
jax: 0.10.0
libtpu: 0.0.40
codegen_flags: <defaults>
</compile_context>

<pallas_src>
import jax
import jax.numpy as jnp
from jax.experimental import pallas as pl
from jax.experimental.pallas import tpu as pltpu


def _label_fill_kernel(lbl_ref, out_ref):
    # lbl_ref: (1,) float32 in SMEM (scalar domain label).
    # out_ref: (n, 1) float32 in VMEM — the module's final output layout.
    out_ref[...] = jnp.full(out_ref.shape, lbl_ref[0], dtype=jnp.float32)


def instance_label_resize(x, need_backprop):
    """Pallas equivalent of InstanceLabelResizeLayer.forward(x, need_backprop)."""
    n = x.shape[0]
    lbs = jnp.asarray(need_backprop, dtype=jnp.float32).reshape(-1)
    L = lbs.shape[0]

    if n == 0:
        # Zero-sized Pallas outputs may not lower cleanly; the original would
        # just return an empty (0, 1) buffer.
        return jnp.ones((0, 1), jnp.float32)

    if L != 1:
        # `resized_lbs[:, 0] = lbs` with L == n: the output column IS the
        # label vector — a pure relayout with zero compute.
        # TODO(synk): no Pallas kernel for this degenerate path — it is a
        # reshape only and XLA handles it for free.
        if L != n:
            raise ValueError(
                f"need_backprop length {L} cannot broadcast to {n} rois "
                "(mirrors the numpy broadcast error in the original module)."
            )
        return lbs.reshape(n, 1)

    # Single-label path: fill the (n, 1) output with the scalar label.
    return pl.pallas_call(
        _label_fill_kernel,
        out_shape=jax.ShapeDtypeStruct((n, 1), jnp.float32),
        in_specs=[pl.BlockSpec(memory_space=pltpu.MemorySpace.SMEM)],
        out_specs=pl.BlockSpec(memory_space=pltpu.MemorySpace.VMEM),
        cost_estimate=pl.CostEstimate(
            flops=0, transcendentals=0, bytes_accessed=4 * n
        ),
    )(lbs)


if __name__ == "__main__":
    key = jax.random.PRNGKey(0)
    kx, _ = jax.random.split(key)

    # Small shapes consistent with the module: 8 RoIs, 32-dim instance
    # features, one domain label per image.
    num_rois, feat_dim = 8, 32
    x = jax.random.normal(kx, (num_rois, feat_dim), dtype=jnp.float32)
    need_backprop = jnp.array([1.0], dtype=jnp.float32)  # domain label

    y = instance_label_resize(x, need_backprop)
    y = jax.block_until_ready(y)

    # Reference (pure JAX, mirrors the numpy code in the PyTorch module).
    ref = jnp.ones((num_rois, 1), jnp.float32)
    ref = ref.at[:, 0].set(jnp.broadcast_to(need_backprop, (num_rois,)))
    assert y.shape == (num_rois, 1)
    assert y.dtype == jnp.float32
    assert bool(jnp.allclose(y, ref))

    # Non-trivial label value, N not a multiple of 8 (masked tail stores).
    y0 = instance_label_resize(jnp.zeros((130, 7), jnp.float32),
                               jnp.array([0.0], dtype=jnp.float32))
    y0 = jax.block_until_ready(y0)
    assert y0.shape == (130, 1)
    assert bool(jnp.allclose(y0, jnp.zeros((130, 1), jnp.float32)))

    # L == n degenerate path (per-RoI labels) — pure relayout, no kernel.
    lbs_vec = jnp.arange(6, dtype=jnp.float32)
    y1 = instance_label_resize(jnp.zeros((6, 3), jnp.float32), lbs_vec)
    y1 = jax.block_until_ready(y1)
    assert y1.shape == (6, 1)
    assert bool(jnp.allclose(y1[:, 0], lbs_vec))

    print("KERNEL_OK")
</pallas_src>

<mosaic_0001>
module attributes {stable_mosaic.version = 11 : i64} {
  func.func @_label_fill_kernel(%arg0: memref<1xf32, #tpu.memory_space<smem>>, %arg1: memref<8x1xf32, #tpu.memory_space<vmem>>) attributes {dimension_semantics = [], scalar_prefetch = 0 : i64, scratch_operands = 0 : i64, tpu.core_type = #tpu.core_type<tc>} {
    %c0 = arith.constant 0 : index
    %0 = memref.load %arg0[%c0] : memref<1xf32, #tpu.memory_space<smem>>
    %1 = vector.broadcast %0 : f32 to vector<8x1xf32>
    %c0_0 = arith.constant 0 : index
    %c0_1 = arith.constant 0 : index
    %2 = vector.load %arg1[%c0_0, %c0_1] : memref<8x1xf32, #tpu.memory_space<vmem>>, vector<8x1xf32>
    tpu.vector_store %arg1[%c0_0, %c0_1], %1 {strides = array<i32>} : memref<8x1xf32, #tpu.memory_space<vmem>>, vector<8x1xf32>,
    return
  }
}

</mosaic_0001>

<bundles_post_ra>
// kernel: tpu_custom_call.1
= control target key start
LH: loop header
LB: loop body
LE: loop exit
PB: predicated region body
PF: predicated region fallthrough
CT: control target
= control target key end

     0   :  { %vm11_vm0 = vcmask 7168   ;;  %s33_s0 = inlined_call_operand.<no memory space> [shape: f32[1], index: 0, kind: input, shape index: {}]   ;;  %s34_s1 = inlined_call_operand.vmem [shape: f32[8,1], index: 1, kind: output, shape index: {}]  }
   0x1   :  { %v10_v0 = vstv %s33_s0 }
   0x2   :  { %12 = vst.msk [vmem:[%s34_s1] sm:$0xff] %vm11_vm0, %v10_v0 }

</bundles_post_ra>
